<compile_context>
chip_gen: v7x
topology: tpu7x:2x2x1
jax: 0.10.0
libtpu: 0.0.40
codegen_flags: <defaults>
</compile_context>

<pallas_src>
import jax
import jax.numpy as jnp
from jax.experimental import pallas as pl
from jax.experimental.pallas import tpu as pltpu


_LANE = 128                      # TPU vreg lane width (last-dim fast axis)
_SUBLANE = 8                     # vreg sublane count
_MIN_PALLAS_ELEMS = _SUBLANE * _LANE   # < one vreg worth: use XLA copy instead


# ------------------------------- kernel ------------------------------------ #

def _copy_kernel(x_ref, o_ref):
    """Identity copy of one lane-dense (tile_rows, 128) VMEM tile."""
    o_ref[...] = x_ref[...]


# --------------------------- tiling heuristics ------------------------------ #

def _target_block_bytes():
    """Per-generation tile size for the pure-HBM-bandwidth identity copy.

    ~4 MiB blocks on v6e/v7x (3.2/1.4 TB/s HBM makes the ~0.35 µs per-step
    overhead expensive with small tiles), ~2 MiB on v5e (slower HBM, smaller
    default scoped VMEM).  Falls back to the conservative 2 MiB if the device
    kind cannot be determined.
    """
    try:
        kind = jax.devices()[0].device_kind.lower()
    except Exception:
        return 2 * 1024 * 1024
    if any(tag in kind for tag in ("v2", "v3", "v4", "v5")):
        return 2 * 1024 * 1024
    return 4 * 1024 * 1024


_BLOCK_BYTES = _target_block_bytes()


def _choose_tile_rows(rows, lanes, itemsize, block_bytes):
    """Pick a row-tile: as large as the byte budget allows, multiple of 8
    sublanes, with a balanced (and preferably even) tile count so v7x's two
    TensorCores split the grid evenly.  No-op concern on v5e/v6e (1 TC)."""
    max_rows = max(_SUBLANE,
                   (block_bytes // (lanes * itemsize)) // _SUBLANE * _SUBLANE)
    if rows <= max_rows:
        return rows                         # single whole-array block
    n_tiles = pl.cdiv(rows, max_rows)
    if n_tiles % 2:                         # prefer even tile count (2 TCs)
        n_tiles += 1
    tile_rows = pl.cdiv(rows, n_tiles)
    tile_rows = ((tile_rows + _SUBLANE - 1) // _SUBLANE) * _SUBLANE
    return min(tile_rows, rows)


# ------------------------------ Pallas copy --------------------------------- #

def _pallas_copy_2d(x2, block_bytes=_BLOCK_BYTES):
    """Pipelined, lane-dense (rows, 128) identity copy through VMEM."""
    rows, lanes = x2.shape
    itemsize = x2.dtype.itemsize
    tile_rows = _choose_tile_rows(rows, lanes, itemsize, block_bytes)
    tile_bytes = tile_rows * lanes * itemsize
    nbytes = rows * lanes * itemsize
    grid = (pl.cdiv(rows, tile_rows),)
    return pl.pallas_call(
        _copy_kernel,
        out_shape=jax.ShapeDtypeStruct(x2.shape, x2.dtype),
        grid=grid,
        in_specs=[pl.BlockSpec((tile_rows, lanes), lambda i: (i, 0))],
        out_specs=pl.BlockSpec((tile_rows, lanes), lambda i: (i, 0)),
        compiler_params=pltpu.CompilerParams(
            dimension_semantics=("parallel",),
            # in + out, double-buffered (4 tiles) + headroom; explicit so the
            # 16 MiB (v5e) / 32 MiB (v6e, v7x) scoped defaults never bite.
            vmem_limit_bytes=int(5 * tile_bytes) + (1 << 20),
        ),
        cost_estimate=pl.CostEstimate(
            flops=0, transcendentals=0, bytes_accessed=2 * nbytes),
    )(x2)


def _materialize_one(t):
    """Return a freshly materialized copy of `t`.

    Lane-aligned tensors (size % 128 == 0, >= one vreg) use the tiled Pallas
    copy.  Tiny / empty / unaligned tensors are materialized with a plain XLA
    device copy — no VMEM staging, no 8x-padded (1, n) sublane layout, no
    per-launch overhead — which is >= any Pallas identity kernel for them.
    """
    t = jnp.asarray(t)
    if t.size >= _MIN_PALLAS_ELEMS and t.size % _LANE == 0:
        x2 = t.reshape(t.size // _LANE, _LANE)
        return _pallas_copy_2d(x2).reshape(t.shape)
    return jnp.copy(t)


# -------------------------------- module ------------------------------------ #

class ListToDict:
    """JAX/Pallas port of the PyTorch ListToDict module.

    Default path is zero-copy — faithful to the PyTorch forward, which also
    performs no data movement.  Set materialize=True to route every tensor
    through an explicit materializing copy (Pallas tiled kernel for
    lane-aligned tensors, XLA device copy otherwise).
    """

    def __init__(self, keys, materialize=False):
        self.keys = list(keys)
        self.materialize = materialize

    def __call__(self, *tensor_list):
        if len(tensor_list) != len(self.keys):
            raise ValueError(
                f"Number of keys ({len(self.keys)}) must match the number of "
                f"tensors ({len(tensor_list)})."
            )
        if self.materialize:
            tensor_list = tuple(_materialize_one(t) for t in tensor_list)
        # Dict construction is pure Python glue — no data path, no kernel.
        return {key: tensor for key, tensor in zip(self.keys, tensor_list)}


# --------------------------------- demo ------------------------------------- #

if __name__ == "__main__":
    key = jax.random.PRNGKey(0)
    k1, k2, k3, k4, k5 = jax.random.split(key, 5)

    # Small example inputs consistent with a multi-output model head.
    x = jax.random.normal(k1, (2, 4, 16, 16), dtype=jnp.float32)  # feature map
    y = jax.random.normal(k2, (2, 8), dtype=jnp.float32)          # logits
    z = jax.random.normal(k3, (2, 32), dtype=jnp.float32)         # embedding

    keys = ["features", "logits", "embedding"]
    ref = {"features": x, "logits": y, "embedding": z}

    # Default (optimal) path: zero-copy dict, no kernel launched.
    out_fast = ListToDict(keys)(x, y, z)

    # Materialize path: Pallas copy for the aligned feature map, XLA copies
    # for the tiny tensors (all now genuinely materialized).
    out_mat = ListToDict(keys, materialize=True)(x, y, z)
    for v in out_mat.values():
        jax.block_until_ready(v)

    for d in (out_fast, out_mat):
        assert set(d.keys()) == set(keys)
        for k in keys:
            assert d[k].shape == ref[k].shape and d[k].dtype == ref[k].dtype
            assert bool(jnp.all(d[k] == ref[k]))

    # Exercise the multi-tile, balanced-grid path without huge arrays by
    # forcing a small per-tile byte budget (64 KiB -> 10 balanced tiles,
    # partial trailing block).
    big = jax.random.normal(k4, (1032, 128), dtype=jnp.float32)
    big_copy = jax.block_until_ready(_pallas_copy_2d(big, block_bytes=64 * 1024))
    assert big_copy.shape == big.shape and bool(jnp.all(big_copy == big))

    # bf16 aligned tensor through the default (single-block) tiled path.
    hb = jax.random.normal(k5, (16, 256), dtype=jnp.bfloat16)
    hb_copy = jax.block_until_ready(_materialize_one(hb))
    assert hb_copy.shape == hb.shape and hb_copy.dtype == hb.dtype
    assert bool(jnp.all(hb_copy == hb))

    print("KERNEL_OK")
</pallas_src>

<mosaic_0001>
module attributes {stable_mosaic.version = 11 : i64} {
  func.func @_copy_kernel(%arg0: i32, %arg1: memref<16x128xf32, #tpu.memory_space<vmem>>, %arg2: memref<16x128xf32, #tpu.memory_space<vmem>>) attributes {dimension_semantics = [#tpu.dimension_semantics<parallel>], iteration_bounds = array<i64: 1>, scalar_prefetch = 0 : i64, scratch_operands = 0 : i64, tpu.core_type = #tpu.core_type<tc>, window_params = [{transform_indices = @transform_0, window_bounds = array<i64: 16, 128>}, {transform_indices = @transform_1, window_bounds = array<i64: 16, 128>}]} {
    %c0 = arith.constant 0 : index
    %c0_0 = arith.constant 0 : index
    %0 = vector.load %arg1[%c0, %c0_0] : memref<16x128xf32, #tpu.memory_space<vmem>>, vector<16x128xf32>
    %c0_1 = arith.constant 0 : index
    %c0_2 = arith.constant 0 : index
    %1 = vector.load %arg2[%c0_1, %c0_2] : memref<16x128xf32, #tpu.memory_space<vmem>>, vector<16x128xf32>
    tpu.vector_store %arg2[%c0_1, %c0_2], %0 {strides = array<i32>} : memref<16x128xf32, #tpu.memory_space<vmem>>, vector<16x128xf32>,
    return
  }
  func.func @transform_0(%arg0: i32) -> (i32, i32) {
    %c0_i32 = arith.constant 0 : i32
    %c0_i32_0 = arith.constant 0 : i32
    return %arg0, %c0_i32 : i32, i32
  }
  func.func @transform_1(%arg0: i32) -> (i32, i32) {
    %c0_i32 = arith.constant 0 : i32
    %c0_i32_0 = arith.constant 0 : i32
    return %arg0, %c0_i32 : i32, i32
  }
}

</mosaic_0001>

<bundles_post_ra>
// kernel: tpu_custom_call.1
= control target key start
LH: loop header
LB: loop body
LE: loop exit
PB: predicated region body
PF: predicated region fallthrough
CT: control target
= control target key end

     0   :  { %6 = vsyncpa [#allocation3], 0  ;;  %s134_s0 = inlined_call_operand.hbm [shape: f32[16,128], index: 0, kind: input, shape index: {}]   ;;  %s135_s1 = inlined_call_operand.hbm [shape: f32[16,128], index: 1, kind: output, shape index: {}]  }
   0x1   :  { %7 = vsyncpa [#allocation4], 0  ;;  %s96_s6 = smov [#allocation2]   ;;  %s48_s10 = scalar_lea.hbm %s134_s0, 256 }
   0x2   :  { %s13_s7 = sshll.u32 %s96_s6, 4  ;;  %p49_p0 = scmp.ne.s32.totalorder %s134_s0, %s48_s10  ;;  %s14_s7 = int_to_ptr.vmem [resolvable:$true] %s13_s7 }
   0x3   :  { %p52_p1 = scmp.lt.u32.totalorder %s48_s10, %s134_s0 }
   0x5   :  { %p54_p2 = pnand %p52_p1, %p49_p0 }
   0x7   :  { %57 = shalt.err (!%p54_p2)
}
   0x8   :  { %s58_s15 = scalar_lea.vmem %s14_s7, 256  ;;  %p63_p4 = scmp.lt.s32.totalorder %s14_s7, %s14_s7 }
   0x9   :  { %p59_p3 = scmp.ne.s32.totalorder %s14_s7, %s58_s15  ;;  %p64_p5 = scmp.lt.s32.totalorder %s58_s15, %s58_s15 }
   0xb   :  { %p65_p6 = por %p64_p5, %p63_p4 }
   0xd   :  { %p66_p7 = pnand %p65_p6, %p59_p3 }
   0xf   :  { %69 = shalt.err (!%p66_p7)
}
  0x10   :  { %s97_s16 = smov 128   ;;  %s98_s17 = smov 8  }
  0x11   :  { %19 = dma.hbm_to_vmem [thread:$0]  %s134_s0, 256, %s14_s7, [#allocation3], %s97_s16, %s97_s16, %s98_s17  }
  0x12   :  { %92 = dma.done.wait [#allocation3], 256  }
  0x13   :  { %93 = vsyncadd [#allocation3], 4294967040  ;;  %s99_s20 = smov [#allocation5]   ;;  %v23_v0 = vld [vmem:[#allocation2] sm:$0xff]  ;;  %v24_v1 = vld [vmem:[#allocation2 + $0x8] sm:$0xff] }
  0x14   :  { %s32_s21 = sshll.u32 %s99_s20, 4  ;;  %25 = vst [vmem:[#allocation5] sm:$0xff] %v23_v0  ;;  %26 = vst [vmem:[#allocation5 + $0x8] sm:$0xff] %v24_v1  ;;  %s33_s21 = int_to_ptr.vmem [resolvable:$true] %s32_s21 }
  0x15   :  { %s70_s22 = scalar_lea.vmem %s33_s21, 256  ;;  %p75_p9 = scmp.lt.s32.totalorder %s33_s21, %s33_s21 }
  0x16   :  { %p71_p8 = scmp.ne.s32.totalorder %s33_s21, %s70_s22  ;;  %p76_p10 = scmp.lt.s32.totalorder %s70_s22, %s70_s22 }
  0x18   :  { %p77_p11 = por %p76_p10, %p75_p9 }
  0x1a   :  { %p78_p12 = pnand %p77_p11, %p71_p8 }
  0x1c   :  { %81 = shalt.err (!%p78_p12)
}
  0x1d   :  { %s82_s0 = scalar_lea.hbm %s135_s1, 256 }
  0x1e   :  { %p83_p13 = scmp.ne.s32.totalorder %s135_s1, %s82_s0  ;;  %p86_p0 = scmp.lt.u32.totalorder %s82_s0, %s135_s1 }
  0x20   :  { %p88_p1 = pnand %p86_p0, %p83_p13 }
  0x22   :  { %91 = shalt.err (!%p88_p1)
}
  0x23   :  { %38 = dma.vmem_to_hbm [thread:$0]  %s33_s21, 256, %s135_s1, [#allocation4], %s97_s16, %s97_s16, %s98_s17  }
  0x24   :  { %94 = dma.done.wait [#allocation4], 256  }
  0x25   :  { %95 = vsyncadd [#allocation4], 4294967040 }
  0x26   :  { %42 = vsyncpa [#allocation3], 1 }
  0x27   :  { %43 = vsyncpa [#allocation4], 1 }

</bundles_post_ra>
